<compile_context>
chip_gen: v7x
topology: tpu7x:2x2x1
jax: 0.10.0
libtpu: 0.0.40
codegen_flags: <defaults>
</compile_context>

<pallas_src>
import math
from functools import partial

import jax
import jax.numpy as jnp
from jax.experimental import pallas as pl
from jax.experimental.pallas import tpu as pltpu

N_HEADS = 2
EPS = 1e-6  # layer_norm_eps


def transformer_layer_kernel(x_ref, mask_ref, g_attn_ref, w_qkv_ref, w_o_ref,
                             g_ffn_ref, w1_ref, w2_ref, o_ref, *,
                             n_heads, eps, ffn_chunk):
    """One (Bt, S, D) batch-block per grid step; all layer math in-kernel."""
    Bt, S, D = x_ref.shape
    d = D // n_heads
    H4 = w1_ref.shape[1]               # 4 * D
    cdt = x_ref.dtype                  # MXU input dtype (bf16 if caller casts)

    # ---------------- attention block ----------------
    xf = x_ref[...].astype(jnp.float32)                                   # (Bt,S,D)
    ms = jnp.mean(xf * xf, axis=-1, keepdims=True)
    xn_f32 = xf * jax.lax.rsqrt(ms + eps) * g_attn_ref[...].astype(jnp.float32)
    xn2d_f32 = xn_f32.reshape(Bt * S, D)
    xn2d = xn2d_f32.astype(cdt)

    # Fused Q/K/V projection: one (Bt*S, D) x (D, 3D) MXU op.  The 1/sqrt(d)
    # scale is already folded into the Q columns by the wrapper.
    qkv = jnp.dot(xn2d, w_qkv_ref[...], preferred_element_type=jnp.float32)  # (Bt*S,3D)

    # Resident mask: (1,S,S) shared or (Bt,S,S) per-batch; broadcasts over Bt.
    mask = mask_ref[...].astype(jnp.float32)
    w_o = w_o_ref[...]                                                    # (D,D) (in,out)

    attn_out = jnp.zeros((Bt * S, D), jnp.float32)
    for h in range(n_heads):                                              # static unroll
        qh = qkv[:, h * d:(h + 1) * d].reshape(Bt, S, d).astype(cdt)
        kh = qkv[:, D + h * d:D + (h + 1) * d].reshape(Bt, S, d).astype(cdt)
        vh = qkv[:, 2 * D + h * d:2 * D + (h + 1) * d].reshape(Bt, S, d).astype(cdt)

        s = jnp.einsum('bqd,bkd->bqk', qh, kh,
                       preferred_element_type=jnp.float32) + mask          # (Bt,S,S)
        m = jnp.max(s, axis=-1, keepdims=True)
        e = jnp.exp(s - m)
        l = jnp.sum(e, axis=-1, keepdims=True)
        r = pl.reciprocal(l, approx=True)       # EUP slot instead of a VALU divide
        r = r * (2.0 - l * r)                   # one Newton step -> ~f32 accuracy
        p = e * r                                                          # softmax

        oh = jnp.einsum('bqk,bkd->bqd', p.astype(cdt), vh,
                        preferred_element_type=jnp.float32)                # (Bt,S,d)
        # Accumulate straight through the per-head slice of Wo — no concat.
        attn_out += jnp.dot(oh.reshape(Bt * S, d).astype(cdt),
                            w_o[h * d:(h + 1) * d, :],
                            preferred_element_type=jnp.float32)

    # NOTE: the PyTorch module reassigns x = RMSNorm(x), so the residual uses
    # the *normalized* x — reproduced exactly here.
    y = xn2d_f32 + attn_out                                               # (Bt*S,D) f32

    # ---------------- feed-forward block (hidden dim chunked) ----------------
    ms2 = jnp.mean(y * y, axis=-1, keepdims=True)
    yn = (y * jax.lax.rsqrt(ms2 + eps) * g_ffn_ref[...].astype(jnp.float32)).astype(cdt)

    h2 = jnp.zeros((Bt * S, D), jnp.float32)
    for c0 in range(0, H4, ffn_chunk):                                    # static unroll
        c1 = min(c0 + ffn_chunk, H4)
        h1 = jnp.dot(yn, w1_ref[:, c0:c1], preferred_element_type=jnp.float32)
        h1 = h1 * jax.nn.sigmoid(h1)                                      # SiLU in f32
        h2 = h2 + jnp.dot(h1.astype(cdt), w2_ref[c0:c1, :],
                          preferred_element_type=jnp.float32)

    # FeedForward adds its residual onto its (un-normalized) input y.
    o_ref[...] = (y + h2).reshape(Bt, S, D).astype(o_ref.dtype)


def _vmem_capacity_bytes():
    """Generation-aware physical VMEM size; conservative v7x (64 MiB) fallback."""
    try:
        cap = getattr(pltpu.get_tpu_info(), "vmem_capacity_bytes", None)
        if cap:
            return int(cap)
    except Exception:
        pass
    return 64 * 1024 * 1024


def _pick_batch_block(B, S, D, itemsize, act_budget_bytes, ffn_chunk,
                      target_rows=512):
    """Largest divisor of B whose per-step activation working set fits the
    budget; capped so the grid keeps >= 2 steps when B >= 2 (both v7x
    TensorCores / megacore get work); stops once matmuls see target_rows."""
    max_bt = B if B < 2 else max(1, B // 2)
    best = 1
    for bt in range(1, max_bt + 1):
        if B % bt:
            continue
        rows = bt * S
        step_bytes = (2 * 2 * rows * D * itemsize                 # x + out, dbl-buffered
                      + rows * (5 * D + 2 * S + ffn_chunk) * 4)   # f32 intermediates
        if bt > 1 and step_bytes > act_budget_bytes:
            break
        best = bt
        if rows >= target_rows:
            break
    return best


def transformer_layer(x, attn_mask, params, *, n_heads=N_HEADS, eps=EPS,
                      batch_block=None, compute_dtype=None, ffn_chunk=512):
    """x: (B,S,D).  attn_mask: additive mask of shape (S,S), (1,S,S), (B,S,S)
    (or with an extra broadcast head dim).  Param weights follow the PyTorch
    (out_features, in_features) convention and are re-packed here (once, at
    trace time) into the kernel-friendly layout.  compute_dtype=jnp.bfloat16
    selects the fast MXU path on v6e/v7x; output keeps x.dtype."""
    B, S, D = x.shape
    assert D % n_heads == 0
    d = D // n_heads
    cdt = jnp.dtype(compute_dtype) if compute_dtype is not None else x.dtype
    itemsize = jnp.dtype(cdt).itemsize
    x_c = x.astype(cdt)

    # ---- pack weights: pre-transpose, fuse QKV, fold 1/sqrt(d) into Q ----
    wq = jnp.asarray(params["wq"]).astype(jnp.float32) * (1.0 / math.sqrt(d))
    w_qkv = jnp.concatenate(
        [wq.T,
         jnp.asarray(params["wk"]).astype(jnp.float32).T,
         jnp.asarray(params["wv"]).astype(jnp.float32).T], axis=1).astype(cdt)  # (D,3D)
    w_o = jnp.asarray(params["wo"]).T.astype(cdt)                               # (D,D)
    w1 = jnp.asarray(params["w1"]).T.astype(cdt)                                # (D,4D)
    w2 = jnp.asarray(params["w2"]).T.astype(cdt)                                # (4D,D)
    g_attn = jnp.asarray(params["g_attn"]).reshape(1, D).astype(jnp.float32)
    g_ffn = jnp.asarray(params["g_ffn"]).reshape(1, D).astype(jnp.float32)

    # ---- mask: keep in f32; shared masks stay fully resident in VMEM ----
    m = jnp.asarray(attn_mask, jnp.float32).reshape(-1, S, S)
    assert m.shape[0] in (1, B), "attn_mask leading dims must broadcast to B"
    mask_shared = (m.shape[0] == 1)

    # ---- FFN hidden chunk (128-lane aligned) ----
    H4 = 4 * D
    if H4 >= 128:
        ffn_chunk = min(H4, max(128, (int(ffn_chunk) // 128) * 128))
    else:
        ffn_chunk = H4

    # ---- generation-aware VMEM budgeting & batch-block choice ----
    vmem_cap = _vmem_capacity_bytes()
    vmem_cap_hi = int(0.85 * vmem_cap)
    weight_bytes = (w_qkv.size + w_o.size + w1.size + w2.size) * itemsize \
        + (g_attn.size + g_ffn.size) * 4
    mask_resident_bytes = m.size * 4 if mask_shared else 0

    if batch_block is None:
        act_budget = max(vmem_cap_hi - weight_bytes - mask_resident_bytes,
                         8 * 1024 * 1024)
        batch_block = _pick_batch_block(B, S, D, itemsize, act_budget, ffn_chunk)
    Bt = batch_block
    assert B % Bt == 0, "batch_block must divide the batch size"
    grid = (B // Bt,)

    step_bytes = (2 * 2 * Bt * S * D * itemsize
                  + Bt * S * (5 * D + 2 * S + ffn_chunk) * 4
                  + (0 if mask_shared else 2 * Bt * S * S * 4))
    vmem_limit = int(min(max(2 * (weight_bytes + mask_resident_bytes + step_bytes),
                             32 * 1024 * 1024),
                         vmem_cap_hi))

    kernel = partial(transformer_layer_kernel, n_heads=n_heads, eps=eps,
                     ffn_chunk=ffn_chunk)

    # Untiled, resident-in-VMEM operands: copied in once, no double buffering.
    def resident():
        return pl.BlockSpec(memory_space=pltpu.MemorySpace.VMEM)

    mask_spec = resident() if mask_shared \
        else pl.BlockSpec((Bt, S, S), lambda b: (b, 0, 0))

    # Advisory cost estimate so XLA schedules around the custom call sensibly.
    flops = 24 * B * S * D * D + 4 * B * S * S * D
    transcendentals = B * n_heads * S * S + 4 * B * S * D + 4 * B * S
    bytes_accessed = 2 * B * S * D * itemsize + m.size * 4 + weight_bytes

    return pl.pallas_call(
        kernel,
        out_shape=jax.ShapeDtypeStruct((B, S, D), x.dtype),
        grid=grid,
        in_specs=[
            pl.BlockSpec((Bt, S, D), lambda b: (b, 0, 0)),   # x (blocked, pipelined)
            mask_spec,                                       # additive attn mask
            resident(),                                      # RMSNorm weight (attn)
            resident(),                                      # fused Wqkv (pre-T, scaled)
            resident(),                                      # Wo (pre-T)
            resident(),                                      # RMSNorm weight (ffn)
            resident(),                                      # FFN W1 (pre-T)
            resident(),                                      # FFN W2 (pre-T)
        ],
        out_specs=pl.BlockSpec((Bt, S, D), lambda b: (b, 0, 0)),
        compiler_params=pltpu.CompilerParams(
            dimension_semantics=("parallel",),
            vmem_limit_bytes=vmem_limit),
        cost_estimate=pl.CostEstimate(flops=flops,
                                      transcendentals=transcendentals,
                                      bytes_accessed=bytes_accessed),
    )(x_c, m, g_attn, w_qkv, w_o, g_ffn, w1, w2)


def reference(x, mask, params, *, n_heads=N_HEADS, eps=EPS):
    """Pure-JAX reference mirroring the PyTorch forward."""
    B, S, D = x.shape
    d = D // n_heads
    g_attn = jnp.asarray(params["g_attn"]).reshape(D)
    g_ffn = jnp.asarray(params["g_ffn"]).reshape(D)
    m3 = jnp.asarray(mask, jnp.float32).reshape(-1, S, S)

    xn = x * jax.lax.rsqrt(jnp.mean(x * x, -1, keepdims=True) + eps) * g_attn
    q = (xn @ params["wq"].T).reshape(B, S, n_heads, d).transpose(0, 2, 1, 3)
    k = (xn @ params["wk"].T).reshape(B, S, n_heads, d).transpose(0, 2, 1, 3)
    v = (xn @ params["wv"].T).reshape(B, S, n_heads, d).transpose(0, 2, 1, 3)
    scores = jnp.einsum("bhqd,bhkd->bhqk", q, k) / math.sqrt(d) + m3[:, None]
    p = jax.nn.softmax(scores, axis=-1)
    attn = jnp.einsum("bhqk,bhkd->bhqd", p, v).transpose(0, 2, 1, 3).reshape(B, S, D)
    y = xn + attn @ params["wo"].T
    yn = y * jax.lax.rsqrt(jnp.mean(y * y, -1, keepdims=True) + eps) * g_ffn
    h1 = yn @ params["w1"].T
    h1 = h1 * jax.nn.sigmoid(h1)
    return y + h1 @ params["w2"].T


if __name__ == "__main__":
    B, S, D = 2, 8, 32
    key = jax.random.PRNGKey(0)
    ks = jax.random.split(key, 8)
    params = {
        "wq": jax.random.normal(ks[0], (D, D), jnp.float32) / math.sqrt(D),
        "wk": jax.random.normal(ks[1], (D, D), jnp.float32) / math.sqrt(D),
        "wv": jax.random.normal(ks[2], (D, D), jnp.float32) / math.sqrt(D),
        "wo": jax.random.normal(ks[3], (D, D), jnp.float32) / math.sqrt(D),
        "w1": jax.random.normal(ks[4], (4 * D, D), jnp.float32) / math.sqrt(D),
        "w2": jax.random.normal(ks[5], (D, 4 * D), jnp.float32) / math.sqrt(4 * D),
        "g_attn": jnp.ones((D,), jnp.float32),   # nn.RMSNorm weight (ones at init)
        "g_ffn": jnp.ones((D,), jnp.float32),
    }
    x = jax.random.normal(ks[6], (B, S, D), jnp.float32)

    causal = jnp.tril(jnp.ones((S, S), jnp.float32))
    mask = jnp.where(causal == 1, 0.0, -1e9)[None]   # (1,S,S): shared, VMEM-resident

    # f32 path (matches module numerics)
    out = transformer_layer(x, mask, params)
    jax.block_until_ready(out)
    ref = reference(x, mask, params)
    assert out.shape == (B, S, D)
    # 1e-3 accounts for the EUP approximate-reciprocal (+ Newton) softmax path
    # and the re-ordered fused-matmul accumulations.
    assert jnp.allclose(out, ref, atol=1e-3, rtol=1e-3), "mismatch vs JAX reference"

    # bf16 compute path (v6e/v7x fast MXU): stats stay f32, output stays f32.
    out_bf = transformer_layer(x, mask, params, compute_dtype=jnp.bfloat16)
    jax.block_until_ready(out_bf)
    assert out_bf.shape == (B, S, D)
    assert bool(jnp.all(jnp.isfinite(out_bf)))
    assert float(jnp.max(jnp.abs(out_bf.astype(jnp.float32) - ref))) < 0.25

    print("KERNEL_OK")
</pallas_src>

<mosaic_0001>
module attributes {stable_mosaic.version = 11 : i64} {
  func.func @transformer_layer_kernel(%arg0: i32, %arg1: memref<1x8x32xf32, #tpu.memory_space<vmem>>, %arg2: memref<1x8x8xf32, #tpu.memory_space<vmem>>, %arg3: memref<1x32xf32, #tpu.memory_space<vmem>>, %arg4: memref<32x96xf32, #tpu.memory_space<vmem>>, %arg5: memref<32x32xf32, #tpu.memory_space<vmem>>, %arg6: memref<1x32xf32, #tpu.memory_space<vmem>>, %arg7: memref<32x128xf32, #tpu.memory_space<vmem>>, %arg8: memref<128x32xf32, #tpu.memory_space<vmem>>, %arg9: memref<1x8x32xf32, #tpu.memory_space<vmem>>) attributes {dimension_semantics = [#tpu.dimension_semantics<parallel>], iteration_bounds = array<i64: 2>, scalar_prefetch = 0 : i64, scratch_operands = 0 : i64, tpu.core_type = #tpu.core_type<tc>, window_params = [{transform_indices = @transform_0, window_bounds = array<i64: 1, 8, 32>}, {pipeline_mode = #tpu.pipeline_mode<synchronous>, transform_indices = @transform_1, window_bounds = array<i64: 1, 8, 8>}, {pipeline_mode = #tpu.pipeline_mode<synchronous>, transform_indices = @transform_2, window_bounds = array<i64: 1, 32>}, {pipeline_mode = #tpu.pipeline_mode<synchronous>, transform_indices = @transform_3, window_bounds = array<i64: 32, 96>}, {pipeline_mode = #tpu.pipeline_mode<synchronous>, transform_indices = @transform_4, window_bounds = array<i64: 32, 32>}, {pipeline_mode = #tpu.pipeline_mode<synchronous>, transform_indices = @transform_5, window_bounds = array<i64: 1, 32>}, {pipeline_mode = #tpu.pipeline_mode<synchronous>, transform_indices = @transform_6, window_bounds = array<i64: 32, 128>}, {pipeline_mode = #tpu.pipeline_mode<synchronous>, transform_indices = @transform_7, window_bounds = array<i64: 128, 32>}, {transform_indices = @transform_8, window_bounds = array<i64: 1, 8, 32>}]} {
    %c0 = arith.constant 0 : index
    %c0_0 = arith.constant 0 : index
    %c0_1 = arith.constant 0 : index
    %0 = vector.load %arg1[%c0, %c0_0, %c0_1] : memref<1x8x32xf32, #tpu.memory_space<vmem>>, vector<1x8x32xf32>
    %1 = arith.mulf %0, %0 : vector<1x8x32xf32>
    %cst = arith.constant dense<0.000000e+00> : vector<1x8xf32>
    %2 = vector.multi_reduction <add>, %1, %cst [2] : vector<1x8x32xf32> to vector<1x8xf32>
    %3 = vector.shape_cast %2 : vector<1x8xf32> to vector<1x8x1xf32>
    %cst_2 = arith.constant 3.200000e+01 : f32
    %4 = vector.broadcast %cst_2 : f32 to vector<1x8x1xf32>
    %5 = arith.divf %3, %4 : vector<1x8x1xf32>
    %cst_3 = arith.constant 9.99999997E-7 : f32
    %6 = vector.broadcast %cst_3 : f32 to vector<1x8x1xf32>
    %7 = arith.addf %5, %6 : vector<1x8x1xf32>
    %8 = math.rsqrt %7 : vector<1x8x1xf32>
    %9 = vector.broadcast %8 : vector<1x8x1xf32> to vector<1x8x32xf32>
    %10 = arith.mulf %0, %9 : vector<1x8x32xf32>
    %c0_4 = arith.constant 0 : index
    %c0_5 = arith.constant 0 : index
    %11 = vector.load %arg3[%c0_4, %c0_5] : memref<1x32xf32, #tpu.memory_space<vmem>>, vector<1x32xf32>
    %12 = vector.shape_cast %11 : vector<1x32xf32> to vector<1x1x32xf32>
    %13 = vector.broadcast %12 : vector<1x1x32xf32> to vector<1x8x32xf32>
    %14 = arith.mulf %10, %13 : vector<1x8x32xf32>
    %15 = vector.shape_cast %14 : vector<1x8x32xf32> to vector<8x32xf32>
    %c0_6 = arith.constant 0 : index
    %c0_7 = arith.constant 0 : index
    %16 = vector.load %arg4[%c0_6, %c0_7] : memref<32x96xf32, #tpu.memory_space<vmem>>, vector<32x96xf32>
    %cst_8 = arith.constant dense<0.000000e+00> : vector<8x96xf32>
    %17 = tpu.matmul %15, %16, %cst_8 {dimension_numbers = #tpu.dot_dimension_numbers<[1], [0], [0], [1], [0, 0, 1, 1], [], []>} : vector<8x32xf32>, vector<32x96xf32>, vector<8x96xf32> -> vector<8x96xf32>
    %c0_9 = arith.constant 0 : index
    %c0_10 = arith.constant 0 : index
    %c0_11 = arith.constant 0 : index
    %18 = vector.load %arg2[%c0_9, %c0_10, %c0_11] : memref<1x8x8xf32, #tpu.memory_space<vmem>>, vector<1x8x8xf32>
    %c0_12 = arith.constant 0 : index
    %c0_13 = arith.constant 0 : index
    %19 = vector.load %arg5[%c0_12, %c0_13] : memref<32x32xf32, #tpu.memory_space<vmem>>, vector<32x32xf32>
    %cst_14 = arith.constant 0.000000e+00 : f32
    %20 = vector.broadcast %cst_14 : f32 to vector<8x32xf32>
    %21 = vector.extract_strided_slice %17 {offsets = [0, 0], sizes = [8, 16], strides = [1, 1]} : vector<8x96xf32> to vector<8x16xf32>
    %22 = vector.shape_cast %21 : vector<8x16xf32> to vector<1x8x16xf32>
    %23 = vector.extract_strided_slice %17 {offsets = [0, 32], sizes = [8, 16], strides = [1, 1]} : vector<8x96xf32> to vector<8x16xf32>
    %24 = vector.shape_cast %23 : vector<8x16xf32> to vector<1x8x16xf32>
    %25 = vector.extract_strided_slice %17 {offsets = [0, 64], sizes = [8, 16], strides = [1, 1]} : vector<8x96xf32> to vector<8x16xf32>
    %26 = vector.shape_cast %25 : vector<8x16xf32> to vector<1x8x16xf32>
    "tpu.trace_start"() <{level = 10 : i32, message = "bqd,bkd->bqk"}> : () -> ()
    %cst_15 = arith.constant dense<0.000000e+00> : vector<1x8x8xf32>
    %27 = tpu.matmul %22, %24, %cst_15 {dimension_numbers = #tpu.dot_dimension_numbers<[2], [2], [1], [1], [0, 0, 0, 1, 1, 1], [0], [0]>} : vector<1x8x16xf32>, vector<1x8x16xf32>, vector<1x8x8xf32> -> vector<1x8x8xf32>
    "tpu.trace_stop"() : () -> ()
    %28 = arith.addf %27, %18 : vector<1x8x8xf32>
    %cst_16 = arith.constant dense<0xFF800000> : vector<1x8xf32>
    %29 = vector.multi_reduction <maximumf>, %28, %cst_16 [2] : vector<1x8x8xf32> to vector<1x8xf32>
    %30 = vector.shape_cast %29 : vector<1x8xf32> to vector<1x8x1xf32>
    %31 = vector.broadcast %30 : vector<1x8x1xf32> to vector<1x8x8xf32>
    %32 = arith.subf %28, %31 : vector<1x8x8xf32>
    %33 = math.exp %32 : vector<1x8x8xf32>
    %cst_17 = arith.constant dense<0.000000e+00> : vector<1x8xf32>
    %34 = vector.multi_reduction <add>, %33, %cst_17 [2] : vector<1x8x8xf32> to vector<1x8xf32>
    %35 = vector.shape_cast %34 : vector<1x8xf32> to vector<1x8x1xf32>
    %36 = tpu.reciprocal %35 {approx = true} : vector<1x8x1xf32> -> vector<1x8x1xf32>
    %37 = arith.mulf %35, %36 : vector<1x8x1xf32>
    %cst_18 = arith.constant 2.000000e+00 : f32
    %38 = vector.broadcast %cst_18 : f32 to vector<1x8x1xf32>
    %39 = arith.subf %38, %37 : vector<1x8x1xf32>
    %40 = arith.mulf %36, %39 : vector<1x8x1xf32>
    %41 = vector.broadcast %40 : vector<1x8x1xf32> to vector<1x8x8xf32>
    %42 = arith.mulf %33, %41 : vector<1x8x8xf32>
    "tpu.trace_start"() <{level = 10 : i32, message = "bqk,bkd->bqd"}> : () -> ()
    %cst_19 = arith.constant dense<0.000000e+00> : vector<1x8x16xf32>
    %43 = tpu.matmul %42, %26, %cst_19 {dimension_numbers = #tpu.dot_dimension_numbers<[2], [1], [1], [2], [0, 0, 0, 1, 1, 2], [0], [0]>} : vector<1x8x8xf32>, vector<1x8x16xf32>, vector<1x8x16xf32> -> vector<1x8x16xf32>
    "tpu.trace_stop"() : () -> ()
    %44 = vector.shape_cast %43 : vector<1x8x16xf32> to vector<8x16xf32>
    %45 = vector.extract_strided_slice %19 {offsets = [0, 0], sizes = [16, 32], strides = [1, 1]} : vector<32x32xf32> to vector<16x32xf32>
    %cst_20 = arith.constant dense<0.000000e+00> : vector<8x32xf32>
    %46 = tpu.matmul %44, %45, %cst_20 {dimension_numbers = #tpu.dot_dimension_numbers<[1], [0], [0], [1], [0, 0, 1, 1], [], []>} : vector<8x16xf32>, vector<16x32xf32>, vector<8x32xf32> -> vector<8x32xf32>
    %47 = arith.addf %20, %46 : vector<8x32xf32>
    %48 = vector.extract_strided_slice %17 {offsets = [0, 16], sizes = [8, 16], strides = [1, 1]} : vector<8x96xf32> to vector<8x16xf32>
    %49 = vector.shape_cast %48 : vector<8x16xf32> to vector<1x8x16xf32>
    %50 = vector.extract_strided_slice %17 {offsets = [0, 48], sizes = [8, 16], strides = [1, 1]} : vector<8x96xf32> to vector<8x16xf32>
    %51 = vector.shape_cast %50 : vector<8x16xf32> to vector<1x8x16xf32>
    %52 = vector.extract_strided_slice %17 {offsets = [0, 80], sizes = [8, 16], strides = [1, 1]} : vector<8x96xf32> to vector<8x16xf32>
    %53 = vector.shape_cast %52 : vector<8x16xf32> to vector<1x8x16xf32>
    "tpu.trace_start"() <{level = 10 : i32, message = "bqd,bkd->bqk"}> : () -> ()
    %cst_21 = arith.constant dense<0.000000e+00> : vector<1x8x8xf32>
    %54 = tpu.matmul %49, %51, %cst_21 {dimension_numbers = #tpu.dot_dimension_numbers<[2], [2], [1], [1], [0, 0, 0, 1, 1, 1], [0], [0]>} : vector<1x8x16xf32>, vector<1x8x16xf32>, vector<1x8x8xf32> -> vector<1x8x8xf32>
    "tpu.trace_stop"() : () -> ()
    %55 = arith.addf %54, %18 : vector<1x8x8xf32>
    %cst_22 = arith.constant dense<0xFF800000> : vector<1x8xf32>
    %56 = vector.multi_reduction <maximumf>, %55, %cst_22 [2] : vector<1x8x8xf32> to vector<1x8xf32>
    %57 = vector.shape_cast %56 : vector<1x8xf32> to vector<1x8x1xf32>
    %58 = vector.broadcast %57 : vector<1x8x1xf32> to vector<1x8x8xf32>
    %59 = arith.subf %55, %58 : vector<1x8x8xf32>
    %60 = math.exp %59 : vector<1x8x8xf32>
    %cst_23 = arith.constant dense<0.000000e+00> : vector<1x8xf32>
    %61 = vector.multi_reduction <add>, %60, %cst_23 [2] : vector<1x8x8xf32> to vector<1x8xf32>
    %62 = vector.shape_cast %61 : vector<1x8xf32> to vector<1x8x1xf32>
    %63 = tpu.reciprocal %62 {approx = true} : vector<1x8x1xf32> -> vector<1x8x1xf32>
    %64 = arith.mulf %62, %63 : vector<1x8x1xf32>
    %cst_24 = arith.constant 2.000000e+00 : f32
    %65 = vector.broadcast %cst_24 : f32 to vector<1x8x1xf32>
    %66 = arith.subf %65, %64 : vector<1x8x1xf32>
    %67 = arith.mulf %63, %66 : vector<1x8x1xf32>
    %68 = vector.broadcast %67 : vector<1x8x1xf32> to vector<1x8x8xf32>
    %69 = arith.mulf %60, %68 : vector<1x8x8xf32>
    "tpu.trace_start"() <{level = 10 : i32, message = "bqk,bkd->bqd"}> : () -> ()
    %cst_25 = arith.constant dense<0.000000e+00> : vector<1x8x16xf32>
    %70 = tpu.matmul %69, %53, %cst_25 {dimension_numbers = #tpu.dot_dimension_numbers<[2], [1], [1], [2], [0, 0, 0, 1, 1, 2], [0], [0]>} : vector<1x8x8xf32>, vector<1x8x16xf32>, vector<1x8x16xf32> -> vector<1x8x16xf32>
    "tpu.trace_stop"() : () -> ()
    %71 = vector.shape_cast %70 : vector<1x8x16xf32> to vector<8x16xf32>
    %72 = vector.extract_strided_slice %19 {offsets = [16, 0], sizes = [16, 32], strides = [1, 1]} : vector<32x32xf32> to vector<16x32xf32>
    %cst_26 = arith.constant dense<0.000000e+00> : vector<8x32xf32>
    %73 = tpu.matmul %71, %72, %cst_26 {dimension_numbers = #tpu.dot_dimension_numbers<[1], [0], [0], [1], [0, 0, 1, 1], [], []>} : vector<8x16xf32>, vector<16x32xf32>, vector<8x32xf32> -> vector<8x32xf32>
    %74 = arith.addf %47, %73 : vector<8x32xf32>
    %75 = arith.addf %15, %74 : vector<8x32xf32>
    %76 = arith.mulf %75, %75 : vector<8x32xf32>
    %cst_27 = arith.constant dense<0.000000e+00> : vector<8xf32>
    %77 = vector.multi_reduction <add>, %76, %cst_27 [1] : vector<8x32xf32> to vector<8xf32>
    %78 = vector.shape_cast %77 : vector<8xf32> to vector<8x1xf32>
    %cst_28 = arith.constant 3.200000e+01 : f32
    %79 = vector.broadcast %cst_28 : f32 to vector<8x1xf32>
    %80 = arith.divf %78, %79 : vector<8x1xf32>
    %cst_29 = arith.constant 9.99999997E-7 : f32
    %81 = vector.broadcast %cst_29 : f32 to vector<8x1xf32>
    %82 = arith.addf %80, %81 : vector<8x1xf32>
    %83 = math.rsqrt %82 : vector<8x1xf32>
    %84 = vector.broadcast %83 : vector<8x1xf32> to vector<8x32xf32>
    %85 = arith.mulf %75, %84 : vector<8x32xf32>
    %c0_30 = arith.constant 0 : index
    %c0_31 = arith.constant 0 : index
    %86 = vector.load %arg6[%c0_30, %c0_31] : memref<1x32xf32, #tpu.memory_space<vmem>>, vector<1x32xf32>
    %87 = vector.broadcast %86 : vector<1x32xf32> to vector<8x32xf32>
    %88 = arith.mulf %85, %87 : vector<8x32xf32>
    %cst_32 = arith.constant 0.000000e+00 : f32
    %89 = vector.broadcast %cst_32 : f32 to vector<8x32xf32>
    %c0_33 = arith.constant 0 : index
    %c0_34 = arith.constant 0 : index
    %90 = vector.load %arg7[%c0_33, %c0_34] : memref<32x128xf32, #tpu.memory_space<vmem>>, vector<32x128xf32>
    %cst_35 = arith.constant dense<0.000000e+00> : vector<8x128xf32>
    %91 = tpu.matmul %88, %90, %cst_35 {dimension_numbers = #tpu.dot_dimension_numbers<[1], [0], [0], [1], [0, 0, 1, 1], [], []>} : vector<8x32xf32>, vector<32x128xf32>, vector<8x128xf32> -> vector<8x128xf32>
    %92 = arith.negf %91 : vector<8x128xf32>
    %93 = math.exp %92 : vector<8x128xf32>
    %cst_36 = arith.constant 1.000000e+00 : f32
    %94 = vector.broadcast %cst_36 : f32 to vector<8x128xf32>
    %95 = arith.addf %94, %93 : vector<8x128xf32>
    %96 = arith.divf %94, %95 : vector<8x128xf32>
    %97 = arith.mulf %91, %96 : vector<8x128xf32>
    %c0_37 = arith.constant 0 : index
    %c0_38 = arith.constant 0 : index
    %98 = vector.load %arg8[%c0_37, %c0_38] : memref<128x32xf32, #tpu.memory_space<vmem>>, vector<128x32xf32>
    %cst_39 = arith.constant dense<0.000000e+00> : vector<8x32xf32>
    %99 = tpu.matmul %97, %98, %cst_39 {dimension_numbers = #tpu.dot_dimension_numbers<[1], [0], [0], [1], [0, 0, 1, 1], [], []>} : vector<8x128xf32>, vector<128x32xf32>, vector<8x32xf32> -> vector<8x32xf32>
    %100 = arith.addf %89, %99 : vector<8x32xf32>
    %101 = arith.addf %75, %100 : vector<8x32xf32>
    %102 = vector.shape_cast %101 : vector<8x32xf32> to vector<1x8x32xf32>
    %c0_40 = arith.constant 0 : index
    %c0_41 = arith.constant 0 : index
    %c0_42 = arith.constant 0 : index
    %103 = vector.load %arg9[%c0_40, %c0_41, %c0_42] : memref<1x8x32xf32, #tpu.memory_space<vmem>>, vector<1x8x32xf32>
    tpu.vector_store %arg9[%c0_40, %c0_41, %c0_42], %102 {strides = array<i32>} : memref<1x8x32xf32, #tpu.memory_space<vmem>>, vector<1x8x32xf32>,
    return
  }
  func.func @transform_0(%arg0: i32) -> (i32, i32, i32) {
    %c0_i32 = arith.constant 0 : i32
    %c0_i32_0 = arith.constant 0 : i32
    %c0_i32_1 = arith.constant 0 : i32
    return %arg0, %c0_i32, %c0_i32_0 : i32, i32, i32
  }
  func.func @transform_1(%arg0: i32) -> (i32, i32, i32) {
    %c0_i32 = arith.constant 0 : i32
    %c0_i32_0 = arith.constant 0 : i32
    %c0_i32_1 = arith.constant 0 : i32
    %c0_i32_2 = arith.constant 0 : i32
    return %c0_i32, %c0_i32_0, %c0_i32_1 : i32, i32, i32
  }
  func.func @transform_2(%arg0: i32) -> (i32, i32) {
    %c0_i32 = arith.constant 0 : i32
    %c0_i32_0 = arith.constant 0 : i32
    %c0_i32_1 = arith.constant 0 : i32
    return %c0_i32, %c0_i32_0 : i32, i32
  }
  func.func @transform_3(%arg0: i32) -> (i32, i32) {
    %c0_i32 = arith.constant 0 : i32
    %c0_i32_0 = arith.constant 0 : i32
    %c0_i32_1 = arith.constant 0 : i32
    return %c0_i32, %c0_i32_0 : i32, i32
  }
  func.func @transform_4(%arg0: i32) -> (i32, i32) {
    %c0_i32 = arith.constant 0 : i32
    %c0_i32_0 = arith.constant 0 : i32
    %c0_i32_1 = arith.constant 0 : i32
    return %c0_i32, %c0_i32_0 : i32, i32
  }
  func.func @transform_5(%arg0: i32) -> (i32, i32) {
    %c0_i32 = arith.constant 0 : i32
    %c0_i32_0 = arith.constant 0 : i32
    %c0_i32_1 = arith.constant 0 : i32
    return %c0_i32, %c0_i32_0 : i32, i32
  }
  func.func @transform_6(%arg0: i32) -> (i32, i32) {
    %c0_i32 = arith.constant 0 : i32
    %c0_i32_0 = arith.constant 0 : i32
    %c0_i32_1 = arith.constant 0 : i32
    return %c0_i32, %c0_i32_0 : i32, i32
  }
  func.func @transform_7(%arg0: i32) -> (i32, i32) {
    %c0_i32 = arith.constant 0 : i32
    %c0_i32_0 = arith.constant 0 : i32
    %c0_i32_1 = arith.constant 0 : i32
    return %c0_i32, %c0_i32_0 : i32, i32
  }
  func.func @transform_8(%arg0: i32) -> (i32, i32, i32) {
    %c0_i32 = arith.constant 0 : i32
    %c0_i32_0 = arith.constant 0 : i32
    %c0_i32_1 = arith.constant 0 : i32
    return %arg0, %c0_i32, %c0_i32_0 : i32, i32, i32
  }
}

</mosaic_0001>

<bundles_post_ra>
// kernel: tpu_custom_call.1
= control target key start
LH: loop header
LB: loop body
LE: loop exit
PB: predicated region body
PF: predicated region fallthrough
CT: control target
= control target key end

     0   :  { %13 = vsyncpa [#allocation3], 0  ;;  %s1789_s0 = inlined_call_operand.vmem [shape: f32[2,8,32], index: 0, kind: input, shape index: {}]   ;;  %s1790_s1 = inlined_call_operand.vmem [shape: f32[1,8,8], index: 1, kind: input, shape index: {}]   ;;  %s1791_s2 = inlined_call_operand.vmem [shape: f32[1,32], index: 2, kind: input, shape index: {}]   ;;  %s1792_s3 = inlined_call_operand.vmem [shape: f32[32,96], index: 3, kind: input, shape index: {}]   ;;  %s1793_s4 = inlined_call_operand.vmem [shape: f32[32,32], index: 4, kind: input, shape index: {}]   ;;  %s1794_s5 = inlined_call_operand.vmem [shape: f32[1,32], index: 5, kind: input, shape index: {}]   ;;  %s1795_s6 = inlined_call_operand.vmem [shape: f32[32,128], index: 6, kind: input, shape index: {}]   ;;  %s1796_s7 = inlined_call_operand.vmem [shape: f32[128,32], index: 7, kind: input, shape index: {}]   ;;  %s1797_s8 = inlined_call_operand.hbm [shape: f32[2,8,32], index: 8, kind: output, shape index: {}]  }
   0x1   :  { %15 = vsyncpa [#allocation3 + $0x1], 0  ;;  %s1525_s27 = smov 0   ;;  %s1527_s28 = smov 0  }
   0x2   :  { %s1529_s29 = smov 0   ;;  %s1531_s30 = smov 0  }
   0x3 LB: > { %s1546_s9 = sadd.s32 4294967295, %s1469_s30   ;;  %s1147_s10 = sadd.s32 4294967294, %s1469_s30   ;;  %s1469_s30 = sphi %s1531_s30, %s1803_s30   ;;  %s1465_s29 = sphi %s1529_s29, %s1802_s29   ;;  %s1461_s28 = sphi %s1527_s28, %s1801_s28   ;;  %s1457_s27 = sphi %s1525_s27, %s1800_s27  }
   0x4   : > { %s1550_s11 = sadd.s32 1, %s1469_s30   ;;  %s201_s12 = sadd.s32 1, %s1465_s29 }
   0x5   : > { %s198_s13 = ssub.s32 %s1469_s30, %s1550_s11  ;;  %p211_p0 = scmp.ne.s32.totalorder %s1465_s29, %s1461_s28 }
   0x6   : > { %p199_p1 = scmp.eq.s32.totalorder %s198_s13, 0  ;;  %p212_p2 = scmp.eq.s32.totalorder %s1546_s9, 1 }
   0x7   : > { %p217_p3 = scmp.ne.s32.totalorder %s1461_s28, %s1457_s27  ;;  %p218_p4 = scmp.eq.s32.totalorder %s1147_s10, 1 }
   0x8   : > { %s1561_s14 = scalar_select %p199_p1, %s1465_s29, %s201_s12  }
   0x9   : > { %p1563_p5 = por %p212_p2, %p211_p0  ;;  %p1567_p6 = por %p218_p4, %p217_p3 }
   0xa   : > { %p1150_p7 = scmp.ge.s32.totalorder %s1469_s30, 1  ;;  %p264_p8 = scmp.lt.s32.totalorder %s1469_s30, 3 }
   0xc   : > { %p265_p9 = pnand %p1150_p7, %p264_p8 }
   0xd   : > { %p297_p10 = scmp.lt.s32.totalorder (!%p265_p9), %s1546_s9, 1  ;;  %vm303_vm0 = vcmask (!%p265_p9), 261120   ;;  %v320_v3 = vld [vmem:[%s1792_s3] sm:$0xff] (!%p265_p9)  ;;  %v321_v4 = vld [vmem:[%s1792_s3 + $0x8] sm:$0xff] (!%p265_p9)  ;;  %v322_v5 = vld [vmem:[%s1792_s3 + $0x10] sm:$0xff] (!%p265_p9)  ;;  %v1471_v6 = vmov (!%p265_p9), 0.0|0.0  }
   0xe   : > { %268 = sbr.rel (%p265_p9) target bundleno = 2652 (0xa5c), region = 52  ;;  %1302 = vmatprep.subr.bf16.mxu0 (!%p265_p9), %v1471_v6  ;;  %v1303_v7 = vpack.c.bf16 (!%p265_p9), %v321_v4, %v320_v3  ;;  %v323_v8 = vld [vmem:[%s1792_s3 + $0x18] sm:$0xff] (!%p265_p9)  ;;  %vm1472_vm1 = vmmov (!%p265_p9), 0   ;;  %v1473_v9 = vmov (!%p265_p9), 0.0   ;;  %1311 = vmatprep.subr.bf16.mxu1 (!%p265_p9), %v1471_v6  ;;  %v1153_v15 = vld [vmem:[%s1791_s2] ss:$0 sm:$0xff] (!%p265_p9) }
   0xf   : > { %1219 = vmatprep.mubr.msk.f32.mxu0 (!%p265_p9), %vm1472_vm1, %v1473_v9  ;;  %1253 = vmatprep.mubr.msk.f32.mxu1 (!%p265_p9), %vm1472_vm1, %v1473_v9  ;;  %v1306_v10 = vpack.c.bf16 (!%p265_p9), %v323_v8, %v322_v5  ;;  %s1474_s19 = smov (!%p265_p9), 96   ;;  %s1475_s20 = smov (!%p265_p9), 112   ;;  %vm405_vm2 = vcmask (!%p265_p9), 130048   ;;  %v397_v21 = vld [vmem:[%s1790_s1] sm:$0xff] (!%p265_p9)  ;;  %vm480_vm3 = vcmask (!%p265_p9), 64512   ;;  %v399_v33 = vld [vmem:[%s1793_s4 + $0x8] sm:$0xff] (!%p265_p9) }
  0x10   : > { %1304 = vmatpush3.bf16.msra.mxu0 (!%p265_p9), %v1303_v7  ;;  %s1476_s23 = smov (!%p265_p9), 64   ;;  %s1477_s24 = smov (!%p265_p9), 80   ;;  %v398_v32 = vld [vmem:[%s1793_s4] sm:$0xff] (!%p265_p9)  ;;  %v400_v61 = vld [vmem:[%s1793_s4 + $0x10] sm:$0xff] (!%p265_p9)  ;;  %v401_v62 = vld [vmem:[%s1793_s4 + $0x18] sm:$0xff] (!%p265_p9) }
  0x11   : > { %1305 = vmatprep.subr.bf16.mxu0 (!%p265_p9), %v1471_v6  ;;  %v1312_v34 = vpack.c.bf16 (!%p265_p9), %v399_v33, %v398_v32  ;;  %s1478_s13 = smov (!%p265_p9), 48   ;;  %v992_v33 = vld [vmem:[%s1796_s7 + $0x30] sm:$0xff] (!%p265_p9)  ;;  %s1167_s26 = sshll.u32 (!%p265_p9), %s1546_s9, 7 }
  0x13   : > { %1313 = vmatpush3.bf16.msra.mxu1 (!%p265_p9), %v1312_v34  ;;  %v993_v34 = vld [vmem:[%s1796_s7 + $0x38] sm:$0xff] (!%p265_p9) }
  0x14   : > { %1307 = vmatpush3.bf16.msra.mxu0 (!%p265_p9), %v1306_v10  ;;  %1320 = vmatprep.subr.bf16.mxu1 (!%p265_p9), %v1471_v6 }
  0x15   : > { %s298_s17 = scalar_select %p297_p10, %s1546_s9, 1  ;;  %1222 = vmatprep.subr.mxu0 %v1473_v9 }
  0x17   : > { %s1152_s18 = sshll.u32 %s298_s17, 3 }
  0x18   : > { %s300_s21 = scalar_lea.vmem %s1789_s0, %s1152_s18  ;;  %s1746_s18 = scalar_lea.hbm %s1797_s8, %s1167_s26 }
  0x19   : > { %v301_v0 = vld [vmem:[%s300_s21] sm:$0xff] }
  0x1a   : > { %v302_v1 = vmul.f32 %v301_v0, %v301_v0 }
  0x1c   : > { %v304_v2 = vsel %vm303_vm0, %v302_v1, 0.0 }
  0x1d   : > { %305 = vadd.xlane.f32.xlu0 %v304_v2 }
  0xaa   : > { %v306_v11 = vpop.xlane.xlu0 %305 }
  0xab   : > { %v308_v12 = vmul.f32 0.03125, %v306_v11 }
  0xad   : > { %v309_v13 = vadd.f32 1e-06, %v308_v12  ;;  %v902_v12 = vld [vmem:[%s1795_s6] sm:$0xff] }
  0xaf   : > { %1391 = vrsqrt.f32 %v309_v13 }
  0xb9   : > { %v1392_v14 = vpop.eup %1391 }
  0xba   : > { %v311_v16 = vmul.f32 %v1392_v14, %v301_v0  ;;  %v1309_v0 = vpack.c.bf16 %v401_v62, %v400_v61  ;;  %v904_v14 = vld [vmem:[%s1795_s6 + $0x10] sm:$0xff] }
  0xbc   : > { %v1602_v17 = vmul.f32 %v1153_v15, %v311_v16  ;;  %v905_v15 = vld [vmem:[%s1795_s6 + $0x18] sm:$0xff] }
  0xbd   : > { %v1318_v16 = vpack.c.bf16 %v905_v15, %v904_v14 }
  0xbe   : > { %1220 = vmatmul.mubr.msk.f32.vlgmr.msra.gmra.mrb[0].mxu0 %vm303_vm0, %v1602_v17 }
  0xbf   : > { %1224 = vmatprep.mubr.msk.f32.mxu0 %vm1472_vm1, %v1473_v9 }
 0x191   : > { %v1608_v18 = vpop.f32.mrb[0].mxu0 }
 0x192   : > { %403 = vrot.lane.b32.xlu0 %v1608_v18, %s1474_s19  ;;  %v1221_v19 = vpop.f32.mrb[1].mxu0 }
 0x196   : > { %571 = vrot.lane.b32.xlu0 %v1608_v18, %s1475_s20  ;;  %s1479_s20 = smov [#allocation2]  }
 0x197   : > { %s1411_s21 = sshll.u32 %s1479_s20, 4  ;;  %s1412_s21 = int_to_ptr.vmem [resolvable:$false] %s1411_s21 }
 0x198   : > { %s1413_s22 = scalar_lea.vmem %s1412_s21, 256 }
 0x204   : > { %v404_v20 = vpop.permute.xlu0 %403 }
 0x205   : > { %1223 = vmatpush3.xpose.msk.msra.mxu0 %vm405_vm2, %v404_v20 }
 0x206   : > { %1227 = vmatprep.subr.mxu0 %v1473_v9 }
 0x208   : > { %1225 = vmatmul.mubr.msk.f32.vlgmr.msra.gmra.mrb[2].mxu0 %vm405_vm2, %v1608_v18  ;;  %v572_v42 = vpop.permute.xlu0 %571 }
 0x209   : > { %1229 = vmatprep.mubr.msk.f32.mxu0 %vm1472_vm1, %v1473_v9 }
 0x2db   : > { %v476_v22 = vpop.f32.mrb[2].mxu0 }
 0x2dc   : > { %v477_v23 = vadd.f32 %v476_v22, %v397_v21  ;;  %v1226_v24 = vpop.f32.mrb[3].mxu0 }
 0x2dd   : > { %v1163_v24 = vld [vmem:[%s1794_s5] ss:$0 sm:$0xff] }
 0x2de   : > { %v481_v25 = vsel %vm480_vm3, %v477_v23, -inf }
 0x2df   : > { %482 = vmax.xlane.f32.xlu1 %v481_v25 }
 0x2f0   : > { %495 = vrot.lane.b32.xlu1 %v1608_v18, %s1476_s23 }
 0x36c   : > { %v483_v26 = vpop.xlane.xlu1 %482 }
 0x36d   : > { %v484_v27 = vsub.f32 %v477_v23, %v483_v26 }
 0x36f   : > { %v485_v28 = vmul.f32 1.442695, %v484_v27  ;;  %v988_v27 = vld [vmem:[%s1796_s7 + $0x10] sm:$0xff] }
 0x370   : > { %v496_v29 = vpop.permute.xlu1 %495 }
 0x371   : > { %1393 = vpow2.f32 %v485_v28  ;;  %1228 = vmatpush3.msra.mxu0 %v496_v29  ;;  %v989_v28 = vld [vmem:[%s1796_s7 + $0x18] sm:$0xff] }
 0x372   : > { %1232 = vmatprep.subr.mxu0 %v1473_v9  ;;  %v1324_v29 = vpack.c.bf16 %v989_v28, %v988_v27 }
 0x37b   : > { %v1394_v30 = vpop.eup %1393 }
 0x37c   : > { %v487_v31 = vsel %vm480_vm3, %v1394_v30, 0.0 }
 0x37d   : > { %488 = vadd.xlane.f32.xlu1 %v487_v31  ;;  %v991_v31 = vld [vmem:[%s1796_s7 + $0x28] sm:$0xff] }
 0x38e   : > { %573 = vrot.lane.b32.xlu1 %v1608_v18, %s1477_s24  ;;  %s294_s24 = sand.u32 1, %s1461_s28  }
 0x38f   : > { %s1151_s25 = sshll.u32 %s294_s24, 3  ;;  %s1075_s19 = scalar_lea.sflag [#allocation3], %s294_s24 }
 0x390   : > { %s296_s10 = scalar_lea.vmem [#allocation2], %s1151_s25 }
 0x391   : > { %s1088_s12 = sshll.u32 %s296_s10, 4  ;;  %s1748_s12 = int_to_ptr.vmem [resolvable:$true] %s1088_s12 }
 0x392   : > { %s1407_s9 = scalar_lea.vmem %s1748_s12, 128  ;;  %p1414_p0 = scmp.lt.s32.totalorder %s1748_s12, %s1412_s21 }
 0x393   : > { %p1408_p11 = scmp.ne.s32.totalorder %s1748_s12, %s1407_s9  ;;  %p1415_p1 = scmp.lt.s32.totalorder %s1413_s22, %s1407_s9 }
 0x395   : > { %p1409_p12 = pnand %p1408_p11, %p1563_p5  ;;  %p1416_p2 = por %p1415_p1, %p1414_p0 }
 0x397   : > { %p1410_p13 = pneg %p1409_p12 }
 0x399   : > { %p1417_p3 = pnand %p1416_p2, %p1410_p13 }
 0x40a   : > { %v489_v35 = vpop.xlane.xlu1 %488 }
 0x40b   : > { %1395 = vrcp.f32 %v489_v35 }
 0x40e   : > { %v574_v41 = vpop.permute.xlu1 %573 }
 0x415   : > { %v1396_v36 = vpop.eup %1395 }
 0x416   : > { %v491_v37 = vmul.f32 %v1396_v36, %v489_v35  ;;  %v1330_v35 = vpack.c.bf16 %v993_v34, %v992_v33 }
 0x418   : > { %v492_v38 = vsub.f32 2.0, %v491_v37  ;;  %v995_v37 = vld [vmem:[%s1796_s7 + $0x48] sm:$0xff] }
 0x41a   : > { %v493_v39 = vmul.f32 %v1396_v36, %v492_v38  ;;  %v994_v36 = vld [vmem:[%s1796_s7 + $0x40] sm:$0xff] }
 0x41b   : > { %v1333_v38 = vpack.c.bf16 %v995_v37, %v994_v36 }
 0x41c   : > { %v494_v40 = vmul.f32 %v1394_v30, %v493_v39  ;;  %v990_v30 = vld [vmem:[%s1796_s7 + $0x20] sm:$0xff]  ;;  %v996_v39 = vld [vmem:[%s1796_s7 + $0x50] sm:$0xff] }
 0x41d   : > { %v1327_v32 = vpack.c.bf16 %v991_v31, %v990_v30 }
 0x41e   : > { %1230 = vmatmul.mubr.msk.f32.vlgmr.msra.gmra.mrb[4].mxu0 %vm480_vm3, %v494_v40  ;;  %v997_v40 = vld [vmem:[%s1796_s7 + $0x58] sm:$0xff] }
 0x41f   : > { %1233 = vmatpush3.xpose.msk.msra.mxu0 %vm405_vm2, %v574_v41  ;;  %1234 = vmatprep.mubr.msk.f32.mxu0 %vm1472_vm1, %v1473_v9  ;;  %v1336_v41 = vpack.c.bf16 %v997_v40, %v996_v39 }
 0x420   : > { %1237 = vmatprep.subr.mxu0 %v1473_v9 }
 0x422   : > { %1235 = vmatmul.mubr.msk.f32.vlgmr.msra.gmra.mrb[6].mxu0 %vm405_vm2, %v572_v42  ;;  %v998_v42 = vld [vmem:[%s1796_s7 + $0x60] sm:$0xff] }
 0x423   : > { %1239 = vmatprep.mubr.msk.f32.mxu0 %vm1472_vm1, %v1473_v9 }
 0x4f1   : > { %v567_v43 = vpop.f32.mrb[4].mxu0 }
 0x4f2   : > { %v1231_v44 = vpop.f32.mrb[5].mxu0  ;;  %1254 = vmatmul.mubr.msk.f32.vlgmr.msra.gmra.mrb[0].mxu1 %vm405_vm2, %v567_v43  ;;  %v999_v43 = vld [vmem:[%s1796_s7 + $0x68] sm:$0xff] }
 0x4f3   : > { %1299 = vmatprep.mubr.msk.f32.mxu1 %vm1472_vm1, %v1473_v9  ;;  %v1339_v44 = vpack.c.bf16 %v999_v43, %v998_v42 }
 0x4f5   : > { %v645_v45 = vpop.f32.mrb[6].mxu0 }
 0x4f6   : > { %v646_v46 = vadd.f32 %v645_v45, %v397_v21  ;;  %v1236_v47 = vpop.f32.mrb[7].mxu0  ;;  %v1000_v45 = vld [vmem:[%s1796_s7 + $0x70] sm:$0xff] }
 0x4f8   : > { %v649_v48 = vsel %vm480_vm3, %v646_v46, -inf }
 0x4f9   : > { %650 = vmax.xlane.f32.xlu1 %v649_v48 }
 0x586   : > { %v651_v49 = vpop.xlane.xlu1 %650 }
 0x587   : > { %v652_v50 = vsub.f32 %v646_v46, %v651_v49  ;;  %v1001_v46 = vld [vmem:[%s1796_s7 + $0x78] sm:$0xff] }
 0x588   : > { %v1342_v47 = vpack.c.bf16 %v1001_v46, %v1000_v45 }
 0x589   : > { %v653_v51 = vmul.f32 1.442695, %v652_v50 }
 0x58b   : > { %1397 = vpow2.f32 %v653_v51 }
 0x595   : > { %v1398_v52 = vpop.eup %1397 }
 0x596   : > { %v655_v53 = vsel %vm480_vm3, %v1398_v52, 0.0 }
 0x597   : > { %656 = vadd.xlane.f32.xlu0 %v655_v53 }
 0x5ad   : > { %663 = vrot.lane.b32.xlu0 %v1608_v18, %s1478_s13  ;;  %v987_v18 = vld [vmem:[%s1796_s7 + $0x8] sm:$0xff] }
 0x5c5   : > { %v881_v54 = vpop.f32.mrb[0].mxu1 }
 0x5c6   : > { %v1255_v55 = vpop.f32.mrb[1].mxu1 }
 0x624   : > { %v657_v56 = vpop.xlane.xlu0 %656 }
 0x625   : > { %1399 = vrcp.f32 %v657_v56 }
 0x628   : > { %v664_v57 = vpop.permute.xlu0 %663 }
 0x629   : > { %1238 = vmatpush3.msra.mxu0 %v664_v57 }
 0x62a   : > { %1308 = vmatprep.subr.bf16.mxu0 %v1471_v6 }
 0x62f   : > { %v1400_v58 = vpop.eup %1399 }
 0x630   : > { %v659_v59 = vmul.f32 %v1400_v58, %v657_v56 }
 0x632   : > { %v660_v60 = vsub.f32 2.0, %v659_v59 }
 0x634   : > { %v661_v63 = vmul.f32 %v1400_v58, %v660_v60 }
 0x636   : > { %v662_v1 = vmul.f32 %v1398_v52, %v661_v63 }
 0x638   : > { %1240 = vmatmul.mubr.msk.f32.vlgmr.msra.gmra.mrb[8].mxu0 %vm480_vm3, %v662_v1 }
 0x639   : > { %1310 = vmatpush3.bf16.msra.mxu0 %v1309_v0  ;;  %1246 = vmatprep.mubr.msk.f32.mxu0 %vm1472_vm1, %v1473_v9 }
 0x63a   : > { %1314 = vmatprep.subr.bf16.mxu0 %v1471_v6 }
 0x70b   : > { %v735_v2 = vpop.f32.mrb[8].mxu0 }
 0x70c   : > { %v1241_v3 = vpop.f32.mrb[9].mxu0  ;;  %1247 = vmatmul.mubr.msk.f32.vlgmr.msra.gmra.mrb[10].mxu0 %vm405_vm2, %v735_v2 }
 0x70d   : > { %1264 = vmatprep.mubr.msk.f32.mxu0 %vm1472_vm1, %v1473_v9  ;;  %v903_v9 = vld [vmem:[%s1795_s6 + $0x8] sm:$0xff] }
 0x70e   : > { %v1315_v13 = vpack.c.bf16 %v903_v9, %v902_v12 }
 0x710   : > { %1316 = vmatpush3.bf16.msra.mxu0 %v1315_v13 }
 0x711   : > { %1317 = vmatprep.subr.bf16.mxu0 %v1471_v6 }
 0x714   : > { %1319 = vmatpush3.bf16.msra.mxu0 %v1318_v16 }
 0x7df   : > { %v808_v4 = vpop.f32.mrb[10].mxu0 }
 0x7e0   : > { %v882_v5 = vadd.f32 %v881_v54, %v808_v4  ;;  %v1248_v7 = vpop.f32.mrb[11].mxu0 }
 0x7e2   : > { %v1662_v8 = vadd.f32 %v882_v5, %v1602_v17  ;;  %v986_v17 = vld [vmem:[%s1796_s7] sm:$0xff] }
 0x7e3   : > { %v1321_v19 = vpack.c.bf16 %v987_v18, %v986_v17 }
 0x7e4   : > { %v886_v10 = vmul.f32 %v1662_v8, %v1662_v8 }
 0x7e5   : > { %1322 = vmatpush3.bf16.msra.mxu1 %v1321_v19 }
 0x7e6   : > { %v887_v11 = vsel %vm303_vm0, %v886_v10, 0.0  ;;  %1323 = vmatprep.subr.bf16.mxu1 %v1471_v6 }
 0x7e7   : > { %888 = vadd.xlane.f32.xlu1 %v887_v11 }
 0x7e9   : > { %1325 = vmatpush3.bf16.msra.mxu1 %v1324_v29 }
 0x7ea   : > { %1326 = vmatprep.subr.bf16.mxu1 %v1471_v6 }
 0x7ed   : > { %1328 = vmatpush3.bf16.msra.mxu1 %v1327_v32 }
 0x7ee   : > { %1329 = vmatprep.subr.bf16.mxu1 %v1471_v6 }
 0x7f1   : > { %1331 = vmatpush3.bf16.msra.mxu1 %v1330_v35 }
 0x7f2   : > { %1332 = vmatprep.subr.bf16.mxu1 %v1471_v6 }
 0x7f5   : > { %1334 = vmatpush3.bf16.msra.mxu1 %v1333_v38 }
 0x7f6   : > { %1335 = vmatprep.subr.bf16.mxu1 %v1471_v6 }
 0x7f9   : > { %1337 = vmatpush3.bf16.msra.mxu1 %v1336_v41 }
 0x7fa   : > { %1338 = vmatprep.subr.bf16.mxu1 %v1471_v6 }
 0x7fd   : > { %1340 = vmatpush3.bf16.msra.mxu1 %v1339_v44 }
 0x7fe   : > { %1341 = vmatprep.subr.bf16.mxu1 %v1471_v6 }
 0x801   : > { %1343 = vmatpush3.bf16.msra.mxu1 %v1342_v47 }
 0x874   : > { %v889_v20 = vpop.xlane.xlu1 %888 }
 0x875   : > { %v890_v21 = vmul.f32 0.03125, %v889_v20 }
 0x877   : > { %v891_v22 = vadd.f32 1e-06, %v890_v21 }
 0x879   : > { %1401 = vrsqrt.f32 %v891_v22 }
 0x883   : > { %v1402_v23 = vpop.eup %1401 }
 0x884   : > { %v893_v25 = vmul.f32 %v1402_v23, %v1662_v8 }
 0x886   : > { %v901_v26 = vmul.f32 %v1163_v24, %v893_v25 }
 0x888   : > { %1265 = vmatmul.mubr.msk.f32.vlgmr.msra.gmra.mrb[12].mxu0 %vm303_vm0, %v901_v26 }
 0x95b   : > { %v975_v48 = vpop.f32.mrb[12].mxu0 }
 0x95c   : > { %v1165_v49 = vmul.f32 -1.442695, %v975_v48  ;;  %v1266_v50 = vpop.f32.mrb[13].mxu0 }
 0x95e   : > { %1403 = vpow2.f32 %v1165_v49 }
 0x968   : > { %v1404_v51 = vpop.eup %1403 }
 0x969   : > { %v982_v52 = vadd.f32 1.0, %v1404_v51 }
 0x96b   : > { %1405 = vrcp.f32 %v982_v52 }
 0x975   : > { %v1406_v53 = vpop.eup %1405 }
 0x976   : > { %v985_v6 = vmul.f32 %v1406_v53, %v975_v48 }
 0x978   : > { %1300 = vmatmul.mubr.f32.vlgmr.msra.gmra.mrb[2].mxu1 %v985_v6 }
 0xa4b   : > { %v1068_v54 = vpop.f32.mrb[2].mxu1 }
 0xa4c   : > { %v1072_v55 = vadd.f32 %v1068_v54, %v1662_v8  ;;  %v1301_v56 = vpop.f32.mrb[3].mxu1 }
 0xa4e   : > { %1073 = vst.msk [vmem:[%s296_s10] sm:$0xff] %vm303_vm0, %v1072_v55 }
 0xa4f   : > { %1420 = shalt.err (!%p1417_p3)
}
 0xa50   : > { %s1421_s23 = scalar_lea.hbm %s1746_s18, 128  ;;  %s1425_s26 = scalar_lea.hbm %s1797_s8, 256 }
 0xa51   : > { %p1422_p4 = scmp.ne.s32.totalorder %s1746_s18, %s1421_s23  ;;  %p1426_p9 = scmp.lt.u32.totalorder %s1746_s18, %s1797_s8 }
 0xa52   : > { %p1427_p10 = scmp.lt.u32.totalorder %s1425_s26, %s1421_s23  ;;  %p1429_p12 = scmp.lt.u32.totalorder %s1421_s23, %s1746_s18 }
 0xa53   : > { %p1423_p7 = pnand %p1422_p4, %p1563_p5 }
 0xa54   : > { %p1428_p11 = por %p1427_p10, %p1426_p9 }
 0xa55   : > { %p1424_p8 = pneg %p1423_p7 }
 0xa56   : > { %p1430_p13 = por %p1429_p12, %p1428_p11 }
 0xa58   : > { %p1431_p0 = pnand %p1430_p13, %p1424_p8 }
 0xa5a   : > { %1434 = shalt.err (!%p1431_p0)
}
 0xa5b   : > { %1344 = dma.vmem_to_hbm [thread:$0]  (%p1563_p5), %s1748_s12, 128, %s1746_s18, %s1075_s19  }
 0xa5c PF: > { %p1350_p1 = scmp.ge.s32.totalorder %s1469_s30, 2  ;;  %s1100_s17 = sand.u32 1, %s1457_s27  }
 0xa5d   : > { %s1101_s9 = scalar_lea.sflag [#allocation3], %s1100_s17 }
 0xa5e   : > { %p1347_p2 = pnand %p1350_p1, %p1567_p6 }
 0xa60   : > { %1452 = dma.done.wait (!%p1347_p2), %s1101_s9, 128  }
 0xa61   : > { %1454 = vsyncadd (!%p1347_p2), %s1101_s9, 4294967168  ;;  %p18_p3 = scmp.ge.s32.totalorder %s1550_s11, 4   ;;  %s1800_s27 = smov %s1461_s28 }
 0xa62   : > { %s1801_s28 = smov %s1465_s29  ;;  %s1802_s29 = smov %s1561_s14 }
 0xa63   : > { %s1803_s30 = smov %s1550_s11  ;;  %20 = sbr.rel (!%p18_p3) target bundleno = 3 (0x3), region = 87 }
 0xa6a   :  { %1106 = vsyncpa [#allocation3], 1 }
 0xa6b   :  { %1108 = vsyncpa [#allocation3 + $0x1], 1 }

</bundles_post_ra>
